<compile_context>
chip_gen: v7x
topology: tpu7x:2x2x1
jax: 0.10.0
libtpu: 0.0.40
codegen_flags: <defaults>
</compile_context>

<pallas_src>
import math

import jax
import jax.numpy as jnp
import numpy as np
from jax.experimental import pallas as pl
from jax.experimental.pallas import tpu as pltpu

MiB = 1024 * 1024


# ------------------------------ helpers ------------------------------------ #

def _round_up(a: int, b: int) -> int:
    return ((a + b - 1) // b) * b


def _cdiv(a: int, b: int) -> int:
    return (a + b - 1) // b


def _vmem_capacity_bytes() -> int:
    """Per-TensorCore VMEM capacity; conservative fallback if query fails."""
    try:
        return int(pltpu.get_tpu_info().vmem_capacity_bytes)
    except Exception:
        return 64 * MiB   # v7x-sized (smallest current generation)


def _tile_caps(vmem_cap: int):
    """Generation-aware tile caps (tm_cap, tk_cap, tn_cap)."""
    if vmem_cap >= 96 * MiB:          # v5e / v6e: 128 MiB VMEM -> big tiles
        return 512, 1024, 1024
    return 256, 1024, 512             # v7x: 64 MiB VMEM -> keep footprint small


def _tile_m(M: int, cap: int):
    """Rows: block dim equal to the full dim is legal, so no padding if M<=cap."""
    if M <= cap:
        return M, M
    nblk = _cdiv(M, cap)
    tm = _round_up(_cdiv(M, nblk), 8)
    return tm, _round_up(M, tm)


def _tile_k(K: int, cap: int):
    """Contraction dim: single full-K tile (no padding) whenever it fits."""
    if K <= cap:
        return K, K
    nblk = _cdiv(K, cap)
    tk = _round_up(_cdiv(K, nblk), 128)
    return tk, _round_up(K, tk)


def _tile_n(N: int, cap: int):
    """Output lane dim: pad to >=128 for lane-dense (unmasked) stores."""
    Np = _round_up(N, 128)
    if Np <= cap:
        return Np, Np
    nblk = _cdiv(Np, cap)
    tn = _round_up(_cdiv(Np, nblk), 128)
    return tn, _round_up(Np, tn)


# ----------------------------- Pallas kernels ------------------------------ #

def _matmul_bias_kernel_f32out(x_ref, w_ref, b_ref, o_ref):
    # f32 output: accumulate directly in the resident output tile
    # (init with bias at k==0, no scratch, no epilogue copy).
    k = pl.program_id(2)

    @pl.when(k == 0)
    def _init():
        o_ref[...] = jnp.broadcast_to(b_ref[...], o_ref.shape)

    o_ref[...] += jnp.dot(x_ref[...].astype(w_ref.dtype), w_ref[...],
                          preferred_element_type=jnp.float32)


def _matmul_bias_kernel_generic(x_ref, w_ref, b_ref, o_ref, acc_ref):
    # Non-f32 output: f32 VMEM accumulator, single final cast.
    k = pl.program_id(2)

    @pl.when(k == 0)
    def _init():
        acc_ref[...] = jnp.broadcast_to(b_ref[...], acc_ref.shape)

    acc_ref[...] += jnp.dot(x_ref[...].astype(w_ref.dtype), w_ref[...],
                            preferred_element_type=jnp.float32)

    @pl.when(k == pl.num_programs(2) - 1)
    def _fin():
        o_ref[...] = acc_ref[...].astype(o_ref.dtype)


# ------------------------------ matmul wrapper ------------------------------ #

def matmul_bias_padded(x2d, w_p, b_p, *, N, tk, tn, out_dtype=None):
    """y = x2d @ W + b where W/b were pre-padded at init to (Kp, Np)/(1, Np).

    x2d: [M, K] (logical, un-padded K).  Returns [M, N].
    """
    M, K = x2d.shape
    Kp, Np = w_p.shape
    assert b_p.shape == (1, Np), b_p.shape
    out_dtype = out_dtype or x2d.dtype

    vmem_cap = _vmem_capacity_bytes()
    tm_cap, _, _ = _tile_caps(vmem_cap)
    tm, Mp = _tile_m(M, tm_cap)

    # Guarantee >=2 blocks on the parallel (M, N) axes when legal, so both
    # TensorCores on a v7x chip shard the grid (harmless on v5e/v6e).
    if (Mp // tm) * (Np // tn) < 2:
        if tn >= 256 and tn % 256 == 0:
            tn //= 2
        elif M >= 16:
            tm = _round_up(_cdiv(M, 2), 8)
            Mp = _round_up(M, tm)

    # Pad x only where strictly needed (zero padding is exact for the matmul).
    if Mp != M or Kp != K:
        x2d = jnp.pad(x2d, ((0, Mp - M), (0, Kp - K)))

    grid = (Mp // tm, Np // tn, Kp // tk)   # K innermost -> output tile resident

    x_bytes = jnp.dtype(x2d.dtype).itemsize
    w_bytes = jnp.dtype(w_p.dtype).itemsize
    o_bytes = jnp.dtype(out_dtype).itemsize

    use_direct = jnp.dtype(out_dtype) == jnp.float32
    kernel = _matmul_bias_kernel_f32out if use_direct else _matmul_bias_kernel_generic
    scratch = [] if use_direct else [pltpu.VMEM((tm, tn), jnp.float32)]

    # Double-buffered VMEM footprint of this tiling -> explicit scoped limit.
    footprint = 2 * (tm * tk * x_bytes + tk * tn * w_bytes
                     + tm * tn * o_bytes + tn * 4)
    if not use_direct:
        footprint += tm * tn * 4
    budget = (vmem_cap * 5) // 8            # ~40 MiB on v7x, ~80 MiB on v5e/v6e
    vmem_limit = int(min(budget, max(32 * MiB, footprint + 4 * MiB)))

    grid_spec = pltpu.PrefetchScalarGridSpec(
        num_scalar_prefetch=0,
        grid=grid,
        in_specs=[
            pl.BlockSpec((tm, tk), lambda i, j, k: (i, k)),
            # NOTE: if profiling shows exposed W DMA at tiny tm, add
            # pipeline_mode=pl.Buffered(3) to this (streamed-weight) spec only.
            pl.BlockSpec((tk, tn), lambda i, j, k: (k, j)),
            pl.BlockSpec((1, tn), lambda i, j, k: (0, j)),
        ],
        out_specs=pl.BlockSpec((tm, tn), lambda i, j, k: (i, j)),
        scratch_shapes=scratch,
    )

    out_p = pl.pallas_call(
        kernel,
        out_shape=jax.ShapeDtypeStruct((Mp, Np), out_dtype),
        grid_spec=grid_spec,
        compiler_params=pltpu.CompilerParams(
            dimension_semantics=("parallel", "parallel", "arbitrary"),
            vmem_limit_bytes=vmem_limit,
        ),
        cost_estimate=pl.CostEstimate(
            flops=2 * Mp * Kp * Np,
            bytes_accessed=(Mp * Kp * x_bytes + Kp * Np * w_bytes
                            + Mp * Np * o_bytes + Np * 4),
            transcendentals=0,
        ),
    )(x2d, w_p, b_p)

    if Mp == M and Np == N:
        return out_p
    return out_p[:M, :N]


# --------------------------- Projection module ------------------------------ #

class Projection:
    """JAX/Pallas port of torchx Projection.

    Parameters are initialized deterministically (PyTorch-Linear-style
    uniform(-1/sqrt(fan_in), 1/sqrt(fan_in))) from a PRNG key.  The weight and
    bias are padded to tile multiples once here (not per forward call).
    """

    def __init__(self, input_shape, output_shape, projection_type="linear",
                 *, key, dtype=jnp.float32, weight_dtype=None):
        assert isinstance(input_shape, (tuple, list)) and len(input_shape) == 2
        assert isinstance(output_shape, (tuple, list)) and len(output_shape) == 2
        self.input_shape = tuple(input_shape)
        self.output_shape = tuple(output_shape)
        self.projection_type = projection_type

        if projection_type == "linear":
            fan_in = input_shape[0] * input_shape[1]
            fan_out = output_shape[0] * output_shape[1]
        elif projection_type == "element_wise":
            assert input_shape[0] == output_shape[0], (
                f"Incompatible shapes for 'element_wise' projection type: "
                f"{input_shape} vs {output_shape}")
            fan_in = input_shape[1]
            fan_out = output_shape[1]
        else:
            raise ValueError(projection_type)

        kw, kb = jax.random.split(key)
        bound = 1.0 / math.sqrt(fan_in)
        # Stored as (K, N) = transpose of PyTorch's (out_features, in_features).
        self.w = jax.random.uniform(kw, (fan_in, fan_out), dtype,
                                    minval=-bound, maxval=bound)
        self.b = jax.random.uniform(kb, (fan_out,), dtype,
                                    minval=-bound, maxval=bound)

        # --- plan the (K, N) tiling once and pre-pad W / b ------------------
        weight_dtype = weight_dtype or dtype
        vmem_cap = _vmem_capacity_bytes()
        _, tk_cap, tn_cap = _tile_caps(vmem_cap)
        self._tk, Kp = _tile_k(fan_in, tk_cap)
        self._tn, Np = _tile_n(fan_out, tn_cap)
        self._N = fan_out

        w_p = self.w.astype(weight_dtype)
        if (Kp, Np) != (fan_in, fan_out):
            w_p = jnp.pad(w_p, ((0, Kp - fan_in), (0, Np - fan_out)))
        b_p = self.b.astype(jnp.float32).reshape(1, fan_out)
        if Np != fan_out:
            b_p = jnp.pad(b_p, ((0, 0), (0, Np - fan_out)))
        self.w_p = w_p
        self.b_p = b_p

    def __call__(self, x: jax.Array) -> jax.Array:
        batch = x.shape[0]
        if self.projection_type == "linear":
            assert x.shape[1:] == self.input_shape, (x.shape, self.input_shape)
            x2d = x.reshape(batch, -1)                              # [B, L_in*D_in]
            y2d = matmul_bias_padded(x2d, self.w_p, self.b_p, N=self._N,
                                     tk=self._tk, tn=self._tn,
                                     out_dtype=x.dtype)             # [B, L_out*D_out]
            return y2d.reshape(batch, *self.output_shape)
        else:  # element_wise
            B, L, D = x.shape
            assert (L, D) == self.input_shape
            x2d = x.reshape(B * L, D)                               # [B*L, D_in]
            y2d = matmul_bias_padded(x2d, self.w_p, self.b_p, N=self._N,
                                     tk=self._tk, tn=self._tn,
                                     out_dtype=x.dtype)             # [B*L, D_out]
            return y2d.reshape(B, L, self.output_shape[1])


# --------------------------------- main -------------------------------------- #

if __name__ == "__main__":
    root = jax.random.PRNGKey(0)
    k_x, k_lin, k_ew, k_bf = jax.random.split(root, 4)

    batch = 2
    input_shape = (8, 32)       # (input_length, input_size)

    x = jax.random.normal(k_x, (batch,) + input_shape, dtype=jnp.float32)
    x_np = np.asarray(x, np.float64)

    # --- 'linear' projection: full linear transform (8,32) -> (4,16) --------
    out_shape_lin = (4, 16)
    proj_lin = Projection(input_shape, out_shape_lin, "linear", key=k_lin)
    y_lin = jax.block_until_ready(proj_lin(x))
    assert y_lin.shape == (batch,) + out_shape_lin, y_lin.shape
    ref_lin = (x_np.reshape(batch, -1)
               @ np.asarray(proj_lin.w, np.float64)
               + np.asarray(proj_lin.b, np.float64)).reshape(
                   batch, *out_shape_lin)
    np.testing.assert_allclose(np.asarray(y_lin, np.float64), ref_lin,
                               rtol=1e-4, atol=1e-4)

    # --- 'element_wise' projection: per-position (8,32) -> (8,16) -----------
    out_shape_ew = (8, 16)
    proj_ew = Projection(input_shape, out_shape_ew, "element_wise", key=k_ew)
    y_ew = jax.block_until_ready(proj_ew(x))
    assert y_ew.shape == (batch,) + out_shape_ew, y_ew.shape
    ref_ew = (x_np
              @ np.asarray(proj_ew.w, np.float64)
              + np.asarray(proj_ew.b, np.float64))
    np.testing.assert_allclose(np.asarray(y_ew, np.float64), ref_ew,
                               rtol=1e-4, atol=1e-4)

    # --- bf16-streamed-weight variant (halves W HBM traffic, f32 accum) -----
    proj_bf = Projection(input_shape, out_shape_lin, "linear", key=k_bf,
                         weight_dtype=jnp.bfloat16)
    y_bf = jax.block_until_ready(proj_bf(x))
    assert y_bf.shape == (batch,) + out_shape_lin, y_bf.shape
    xb = np.asarray(x.reshape(batch, -1).astype(jnp.bfloat16)
                    .astype(jnp.float32), np.float64)
    wb = np.asarray(proj_bf.w.astype(jnp.bfloat16).astype(jnp.float32),
                    np.float64)
    ref_bf = (xb @ wb + np.asarray(proj_bf.b, np.float64)).reshape(
        batch, *out_shape_lin)
    np.testing.assert_allclose(np.asarray(y_bf, np.float64), ref_bf,
                               rtol=5e-3, atol=5e-3)

    print("KERNEL_OK")
</pallas_src>

<mosaic_0001>
module attributes {stable_mosaic.version = 11 : i64} {
  func.func @_matmul_bias_kernel_f32out(%arg0: i32, %arg1: i32, %arg2: i32, %arg3: memref<2x256xf32, #tpu.memory_space<vmem>>, %arg4: memref<256x128xf32, #tpu.memory_space<vmem>>, %arg5: memref<1x128xf32, #tpu.memory_space<vmem>>, %arg6: memref<2x128xf32, #tpu.memory_space<vmem>>) attributes {dimension_semantics = [#tpu.dimension_semantics<parallel>, #tpu.dimension_semantics<parallel>, #tpu.dimension_semantics<arbitrary>], iteration_bounds = array<i64: 1, 1, 1>, scalar_prefetch = 0 : i64, scratch_operands = 0 : i64, tpu.core_type = #tpu.core_type<tc>, window_params = [{transform_indices = @transform_0, window_bounds = array<i64: 2, 256>}, {transform_indices = @transform_1, window_bounds = array<i64: 256, 128>}, {transform_indices = @transform_2, window_bounds = array<i64: 1, 128>}, {transform_indices = @transform_3, window_bounds = array<i64: 2, 128>}]} {
    %c0_i32 = arith.constant 0 : i32
    %0 = arith.cmpi eq, %arg2, %c0_i32 : i32
    %1 = arith.extui %0 : i1 to i32
    %c0_i32_0 = arith.constant 0 : i32
    %2 = arith.cmpi ne, %1, %c0_i32_0 : i32
    scf.if %2 {
      %c0_8 = arith.constant 0 : index
      %c0_9 = arith.constant 0 : index
      %9 = vector.load %arg5[%c0_8, %c0_9] : memref<1x128xf32, #tpu.memory_space<vmem>>, vector<1x128xf32>
      %10 = vector.shape_cast %9 : vector<1x128xf32> to vector<1x128xf32>
      %11 = vector.broadcast %10 : vector<1x128xf32> to vector<2x128xf32>
      %c0_10 = arith.constant 0 : index
      %c0_11 = arith.constant 0 : index
      %12 = vector.load %arg6[%c0_10, %c0_11] : memref<2x128xf32, #tpu.memory_space<vmem>>, vector<2x128xf32>
      tpu.vector_store %arg6[%c0_10, %c0_11], %11 {strides = array<i32>} : memref<2x128xf32, #tpu.memory_space<vmem>>, vector<2x128xf32>,
    } else {
    }
    %c0 = arith.constant 0 : index
    %c0_1 = arith.constant 0 : index
    %3 = vector.load %arg6[%c0, %c0_1] : memref<2x128xf32, #tpu.memory_space<vmem>>, vector<2x128xf32>
    %c0_2 = arith.constant 0 : index
    %c0_3 = arith.constant 0 : index
    %4 = vector.load %arg3[%c0_2, %c0_3] : memref<2x256xf32, #tpu.memory_space<vmem>>, vector<2x256xf32>
    %c0_4 = arith.constant 0 : index
    %c0_5 = arith.constant 0 : index
    %5 = vector.load %arg4[%c0_4, %c0_5] : memref<256x128xf32, #tpu.memory_space<vmem>>, vector<256x128xf32>
    %cst = arith.constant dense<0.000000e+00> : vector<2x128xf32>
    %6 = tpu.matmul %4, %5, %cst {dimension_numbers = #tpu.dot_dimension_numbers<[1], [0], [0], [1], [0, 0, 1, 1], [], []>} : vector<2x256xf32>, vector<256x128xf32>, vector<2x128xf32> -> vector<2x128xf32>
    %7 = arith.addf %3, %6 : vector<2x128xf32>
    %c0_6 = arith.constant 0 : index
    %c0_7 = arith.constant 0 : index
    %8 = vector.load %arg6[%c0_6, %c0_7] : memref<2x128xf32, #tpu.memory_space<vmem>>, vector<2x128xf32>
    tpu.vector_store %arg6[%c0_6, %c0_7], %7 {strides = array<i32>} : memref<2x128xf32, #tpu.memory_space<vmem>>, vector<2x128xf32>,
    return
  }
  func.func @transform_0(%arg0: i32, %arg1: i32, %arg2: i32) -> (i32, i32) {
    %c0_i32 = arith.constant 0 : i32
    return %arg0, %arg2 : i32, i32
  }
  func.func @transform_1(%arg0: i32, %arg1: i32, %arg2: i32) -> (i32, i32) {
    %c0_i32 = arith.constant 0 : i32
    return %arg2, %arg1 : i32, i32
  }
  func.func @transform_2(%arg0: i32, %arg1: i32, %arg2: i32) -> (i32, i32) {
    %c0_i32 = arith.constant 0 : i32
    %c0_i32_0 = arith.constant 0 : i32
    return %c0_i32, %arg1 : i32, i32
  }
  func.func @transform_3(%arg0: i32, %arg1: i32, %arg2: i32) -> (i32, i32) {
    %c0_i32 = arith.constant 0 : i32
    return %arg0, %arg1 : i32, i32
  }
}

</mosaic_0001>

<bundles_post_ra>
// kernel: tpu_custom_call.1
= control target key start
LH: loop header
LB: loop body
LE: loop exit
PB: predicated region body
PF: predicated region fallthrough
CT: control target
= control target key end

     0   :  { %8 = vsyncpa [#allocation3], 0  ;;  %s403_s0 = inlined_call_operand.hbm [shape: f32[2,256], index: 0, kind: input, shape index: {}]   ;;  %s404_s1 = inlined_call_operand.hbm [shape: f32[256,128], index: 1, kind: input, shape index: {}]   ;;  %s405_s2 = inlined_call_operand.vmem [shape: f32[1,128], index: 2, kind: input, shape index: {}]   ;;  %s406_s3 = inlined_call_operand.hbm [shape: f32[2,128], index: 3, kind: output, shape index: {}]  }
   0x1   :  { %9 = vsyncpa [#allocation6], 0 }
   0x2   :  { %10 = vsyncpa [#allocation4], 0  ;;  %s332_s12 = smov [#allocation2]   ;;  %s333_s14 = smov [#allocation5]  }
   0x3   :  { %s17_s13 = sshll.u32 %s332_s12, 4  ;;  %s26_s15 = sshll.u32 %s333_s14, 4  ;;  %s18_s13 = int_to_ptr.vmem [resolvable:$true] %s17_s13  ;;  %s357_s15 = int_to_ptr.vmem [resolvable:$true] %s26_s15 }
   0x4   :  { %s260_s18 = scalar_lea.hbm %s403_s0, 64 }
   0x5   :  { %p261_p0 = scmp.ne.s32.totalorder %s403_s0, %s260_s18  ;;  %p264_p1 = scmp.lt.u32.totalorder %s260_s18, %s403_s0 }
   0x7   :  { %p266_p2 = pnand %p264_p1, %p261_p0 }
   0x9   :  { %269 = shalt.err (!%p266_p2)
}
   0xa   :  { %s270_s23 = scalar_lea.vmem %s18_s13, 64  ;;  %p275_p4 = scmp.lt.s32.totalorder %s18_s13, %s18_s13 }
   0xb   :  { %p271_p3 = scmp.ne.s32.totalorder %s18_s13, %s270_s23  ;;  %p276_p5 = scmp.lt.s32.totalorder %s270_s23, %s270_s23 }
   0xd   :  { %p277_p6 = por %p276_p5, %p275_p4 }
   0xf   :  { %p278_p7 = pnand %p277_p6, %p271_p3 }
  0x11   :  { %281 = shalt.err (!%p278_p7)
}
  0x12   :  { %20 = dma.hbm_to_vmem [thread:$0]  %s403_s0, 64, %s18_s13, [#allocation3]  }
  0x13   :  { %s282_s28 = scalar_lea.hbm %s404_s1, 4096 }
  0x14   :  { %p283_p8 = scmp.ne.s32.totalorder %s404_s1, %s282_s28  ;;  %p286_p9 = scmp.lt.u32.totalorder %s282_s28, %s404_s1 }
  0x16   :  { %p288_p10 = pnand %p286_p9, %p283_p8 }
  0x18   :  { %291 = shalt.err (!%p288_p10)
}
  0x19   :  { %s292_s6 = scalar_lea.vmem %s357_s15, 4096  ;;  %p297_p12 = scmp.lt.s32.totalorder %s357_s15, %s357_s15 }
  0x1a   :  { %p293_p11 = scmp.ne.s32.totalorder %s357_s15, %s292_s6  ;;  %p298_p13 = scmp.lt.s32.totalorder %s292_s6, %s292_s6 }
  0x1c   :  { %p299_p0 = por %p298_p13, %p297_p12 }
  0x1e   :  { %p300_p1 = pnand %p299_p0, %p293_p11 }
  0x20   :  { %303 = shalt.err (!%p300_p1)
}
  0x21   :  { %s334_s0 = smov 128   ;;  %s335_s7 = smov 8  }
  0x22   :  { %32 = dma.hbm_to_vmem [thread:$0]  %s404_s1, 4096, %s357_s15, [#allocation6], %s334_s0, %s334_s0, %s335_s7  }
  0x23   :  { %326 = dma.done.wait [#allocation3], 64  }
  0x24   :  { %327 = vsyncadd [#allocation3], 4294967232 }
  0x25   :  { %328 = dma.done.wait [#allocation6], 4096  }
  0x26   :  { %329 = vsyncadd [#allocation6], 4294963200  ;;  %v71_v0 = vld [vmem:[#allocation5 + $0x80] sm:$0xff]  ;;  %v72_v1 = vld [vmem:[#allocation5 + $0x88] sm:$0xff]  ;;  %s336_s11 = smov [#allocation7]  }
  0x27   :  { %v55_v2 = vld [vmem:[#allocation5] sm:$0xff]  ;;  %v223_v3 = vpack.c.bf16 %v72_v1, %v71_v0  ;;  %v56_v4 = vld [vmem:[#allocation5 + $0x8] sm:$0xff]  ;;  %v73_v5 = vld [vmem:[#allocation5 + $0x90] sm:$0xff]  ;;  %s176_s12 = sshll.u32 %s336_s11, 4  ;;  %s177_s12 = int_to_ptr.vmem [resolvable:$true] %s176_s12 }
  0x28   :  { %v74_v6 = vld [vmem:[#allocation5 + $0x98] sm:$0xff]  ;;  %v225_v7 = vpack.c.bf16 %v56_v4, %v55_v2  ;;  %v57_v9 = vld [vmem:[#allocation5 + $0x10] sm:$0xff]  ;;  %v75_v11 = vld [vmem:[#allocation5 + $0xa0] sm:$0xff]  ;;  %s304_s13 = scalar_lea.vmem %s177_s12, 32  ;;  %p309_p3 = scmp.lt.s32.totalorder %s177_s12, %s177_s12 }
  0x29   :  { %v227_v8 = vpack.c.bf16 %v74_v6, %v73_v5  ;;  %v58_v10 = vld [vmem:[#allocation5 + $0x18] sm:$0xff]  ;;  %224 = vmatprep.subr.bf16.mxu0 %v223_v3  ;;  %v76_v12 = vld [vmem:[#allocation5 + $0xa8] sm:$0xff]  ;;  %v59_v15 = vld [vmem:[#allocation5 + $0x20] sm:$0xff]  ;;  %p305_p2 = scmp.ne.s32.totalorder %s177_s12, %s304_s13  ;;  %p310_p4 = scmp.lt.s32.totalorder %s304_s13, %s304_s13 }
  0x2a   :  { %226 = vmatpush3.bf16.msra.mxu0 %v225_v7  ;;  %v229_v13 = vpack.c.bf16 %v58_v10, %v57_v9  ;;  %v231_v14 = vpack.c.bf16 %v76_v12, %v75_v11  ;;  %v60_v16 = vld [vmem:[#allocation5 + $0x28] sm:$0xff]  ;;  %v77_v17 = vld [vmem:[#allocation5 + $0xb0] sm:$0xff]  ;;  %v78_v18 = vld [vmem:[#allocation5 + $0xb8] sm:$0xff] }
  0x2b   :  { %228 = vmatprep.subr.bf16.mxu0 %v227_v8  ;;  %v233_v19 = vpack.c.bf16 %v60_v16, %v59_v15  ;;  %v235_v20 = vpack.c.bf16 %v78_v18, %v77_v17  ;;  %v61_v21 = vld [vmem:[#allocation5 + $0x30] sm:$0xff]  ;;  %v62_v22 = vld [vmem:[#allocation5 + $0x38] sm:$0xff]  ;;  %v79_v23 = vld [vmem:[#allocation5 + $0xc0] sm:$0xff]  ;;  %p311_p5 = por %p310_p4, %p309_p3 }
  0x2c   :  { %v80_v24 = vld [vmem:[#allocation5 + $0xc8] sm:$0xff]  ;;  %v187_v25 = vld.sshfl [vmem:[#allocation2] sm:$0x33 pattern:$0x76325410]  ;;  %v237_v27 = vpack.c.bf16 %v62_v22, %v61_v21  ;;  %v63_v29 = vld [vmem:[#allocation5 + $0x40] sm:$0xff] }
  0x2d   :  { %v95_v26 = vcombine.high %v187_v25, %v187_v25  ;;  %v239_v28 = vpack.c.bf16 %v80_v24, %v79_v23  ;;  %v64_v30 = vld [vmem:[#allocation5 + $0x48] sm:$0xff]  ;;  %v81_v31 = vld [vmem:[#allocation5 + $0xd0] sm:$0xff]  ;;  %v82_v32 = vld [vmem:[#allocation5 + $0xd8] sm:$0xff]  ;;  %p312_p6 = pnand %p311_p5, %p305_p2 }
  0x2e   :  { %230 = vmatpush3.bf16.msra.mxu0 %v229_v13  ;;  %v241_v33 = vpack.c.bf16 %v64_v30, %v63_v29  ;;  %v243_v34 = vpack.c.bf16 %v82_v32, %v81_v31  ;;  %v65_v35 = vld [vmem:[#allocation5 + $0x50] sm:$0xff]  ;;  %v66_v36 = vld [vmem:[#allocation5 + $0x58] sm:$0xff]  ;;  %v83_v37 = vld [vmem:[#allocation5 + $0xe0] sm:$0xff] }
  0x2f   :  { %232 = vmatprep.subr.bf16.mxu0 %v231_v14  ;;  %162 = vmatprep.mubr.f32.mxu0 %v95_v26  ;;  %v84_v38 = vld [vmem:[#allocation5 + $0xe8] sm:$0xff]  ;;  %v245_v39 = vpack.c.bf16 %v66_v36, %v65_v35  ;;  %v67_v41 = vld [vmem:[#allocation5 + $0x60] sm:$0xff]  ;;  %v85_v43 = vld [vmem:[#allocation5 + $0xf0] sm:$0xff] }
  0x30   :  { %v247_v40 = vpack.c.bf16 %v84_v38, %v83_v37  ;;  %v68_v42 = vld [vmem:[#allocation5 + $0x68] sm:$0xff]  ;;  %v86_v44 = vld [vmem:[#allocation5 + $0xf8] sm:$0xff]  ;;  %v69_v47 = vld [vmem:[#allocation5 + $0x70] sm:$0xff] }
  0x31   :  { %v249_v45 = vpack.c.bf16 %v68_v42, %v67_v41  ;;  %v251_v46 = vpack.c.bf16 %v86_v44, %v85_v43  ;;  %v70_v48 = vld [vmem:[#allocation5 + $0x78] sm:$0xff] }
  0x32   :  { %234 = vmatpush3.bf16.msra.mxu0 %v233_v19  ;;  %v253_v49 = vpack.c.bf16 %v70_v48, %v69_v47  ;;  %v186_v50 = vld [vmem:[%s405_s2] ss:$0 sm:$0xff] }
  0x33   :  { %236 = vmatprep.subr.bf16.mxu0 %v235_v20  ;;  %52 = vst [vmem:[#allocation7] sm:$0x3] %v186_v50 }
  0x36   :  { %238 = vmatpush3.bf16.msra.mxu0 %v237_v27 }
  0x37   :  { %240 = vmatprep.subr.bf16.mxu0 %v239_v28 }
  0x3a   :  { %242 = vmatpush3.bf16.msra.mxu0 %v241_v33  ;;  %v53_v52 = vld [vmem:[#allocation7] sm:$0x3] }
  0x3b   :  { %244 = vmatprep.subr.bf16.mxu0 %v243_v34 }
  0x3e   :  { %246 = vmatpush3.bf16.msra.mxu0 %v245_v39 }
  0x3f   :  { %248 = vmatprep.subr.bf16.mxu0 %v247_v40 }
  0x42   :  { %250 = vmatpush3.bf16.msra.mxu0 %v249_v45 }
  0x43   :  { %252 = vmatprep.subr.bf16.mxu0 %v251_v46 }
  0x46   :  { %254 = vmatpush3.bf16.msra.mxu0 %v253_v49 }
  0x49   :  { %163 = vmatmul.mubr.f32.vlgmr.msra.gmra.mrb[0].mxu0 %v187_v25 }
 0x11c   :  { %v220_v51 = vpop.f32.mrb[0].mxu0 }
 0x11d   :  { %v221_v53 = vpop.f32.mrb[1].mxu0 }
 0x11e   :  { %v222_v54 = vadd.f32 %v221_v53, %v220_v51 }
 0x120   :  { %v168_v55 = vadd.f32 %v222_v54, %v53_v52 }
 0x122   :  { %169 = vst [vmem:[#allocation7] sm:$0x3] %v168_v55 }
 0x123   :  { %315 = shalt.err (!%p312_p6)
}
 0x124   :  { %s316_s2 = scalar_lea.hbm %s406_s3, 32 }
 0x125   :  { %p317_p7 = scmp.ne.s32.totalorder %s406_s3, %s316_s2  ;;  %p320_p8 = scmp.lt.u32.totalorder %s316_s2, %s406_s3 }
 0x127   :  { %p322_p9 = pnand %p320_p8, %p317_p7 }
 0x129   :  { %325 = shalt.err (!%p322_p9)
}
 0x12a   :  { %179 = dma.vmem_to_hbm [thread:$0]  %s177_s12, 32, %s406_s3, [#allocation4]  }
 0x12b   :  { %330 = dma.done.wait [#allocation4], 32  }
 0x12c   :  { %331 = vsyncadd [#allocation4], 4294967264 }
 0x12d   :  { %183 = vsyncpa [#allocation3], 1 }
 0x12e   :  { %184 = vsyncpa [#allocation6], 1 }
 0x12f   :  { %185 = vsyncpa [#allocation4], 1 }

</bundles_post_ra>
